<compile_context>
chip_gen: v5e
topology: v5e:2x2
jax: 0.10.0
libtpu: 0.0.40
codegen_flags: <defaults>
</compile_context>

<pallas_src>
import jax
import jax.numpy as jnp
import numpy as np
from jax import lax
from jax.experimental import pallas as pl
from jax.experimental.pallas import tpu as pltpu

NUM_KERNELS = 6


def _fused_conv_kernel(x_ref, w_ref, b_ref, o_ref):
    # x_ref : (M, K)   bf16  H-unfolded, width-flattened, padded activations
    # w_ref : (K, Nc)  bf16  merged-branch im2col (Toeplitz) weight matrix
    # b_ref : (1, Nc)  f32   merged (mean) bias, tiled over W
    # o_ref : (M, Nc)  f32   lane-dense output slab (Nc = W*Cout = 128)
    acc = jnp.dot(x_ref[...], w_ref[...], preferred_element_type=jnp.float32)
    o_ref[...] = (acc + b_ref[...]).astype(o_ref.dtype)


def make_inception_block_v3(weights, biases, ksizes, image_hw):
    """One-time weight preparation; returns a jitted forward(x_nchw)->NCHW."""
    n_k = len(ksizes)
    Cout, Cin = weights[0].shape[0], weights[0].shape[1]
    H, W = image_hw
    Kh = max(ksizes)                    # 21
    P = (Kh - 1) // 2                   # 10
    Hp, Wp = H + 2 * P, W + 2 * P
    K = Kh * Wp * Cin                   # 3024 at toy size
    Nc = W * Cout                       # 128 at toy size

    # ---------------- init-time weight preparation (cached) -----------------
    # 1) fold the 6 branches into a single Kh x Kh kernel; mean (1/6) applied.
    w_merged = np.zeros((Kh, Kh, Cin, Cout), np.float32)
    for w_i, k in zip(weights, ksizes):
        off = (Kh - k) // 2
        w_merged[off:off + k, off:off + k] += np.transpose(
            np.asarray(w_i, np.float32), (2, 3, 1, 0))        # (k, k, Cin, Cout)
    w_merged /= n_k

    # 2) expand along width into a Toeplitz band, then flatten (kh, width*Cin)
    #    into one contraction axis -> single im2col matmul RHS.
    w_flat = w_merged.reshape(Kh, Kh * Cin, Cout)
    w_toep = np.zeros((Kh, Wp * Cin, Nc), np.float32)
    for w in range(W):
        w_toep[:, w * Cin:w * Cin + Kh * Cin, w * Cout:(w + 1) * Cout] = w_flat
    w_big = jnp.asarray(w_toep.reshape(K, Nc), dtype=jnp.bfloat16)
    # TODO(synk): at TimesNet-scale W/C this dense Toeplitz exceeds v7x VMEM;
    # switch to a W-tiled banded Toeplitz with a W-tile grid axis.

    # 3) merged bias (mean over branches), tiled over W to match (1, W*Cout).
    b_merged = np.asarray(biases, np.float32).sum(0) / n_k            # (Cout,)
    b_row = jnp.asarray(np.tile(b_merged, W)[None, :], jnp.float32)   # (1, Nc)

    # H-unfold gather indices: row h needs padded rows h .. h+Kh-1.
    rows = jnp.asarray(np.arange(H)[:, None] + np.arange(Kh)[None, :],
                       jnp.int32)                                     # (H, Kh)

    @jax.jit
    def forward(x_nchw):
        N = x_nchw.shape[0]
        M = N * H
        # NCHW -> NHWC, cast to bf16 once, 'same'-pad once, flatten width.
        x = jnp.transpose(x_nchw, (0, 2, 3, 1)).astype(jnp.bfloat16)
        x = jnp.pad(x, ((0, 0), (P, P), (P, P), (0, 0)))
        x = x.reshape(N, Hp, Wp * Cin)
        # Unfold the Kh height taps into the contraction axis, fold batch into M.
        x_unf = x[:, rows, :].reshape(M, K)            # (N*H, Kh*Wp*Cin)

        out = pl.pallas_call(
            _fused_conv_kernel,
            grid=(1,),
            in_specs=[
                pl.BlockSpec((M, K), lambda i: (0, 0)),
                pl.BlockSpec((K, Nc), lambda i: (0, 0)),
                pl.BlockSpec((1, Nc), lambda i: (0, 0)),
            ],
            out_specs=pl.BlockSpec((M, Nc), lambda i: (0, 0)),
            out_shape=jax.ShapeDtypeStruct((M, Nc), jnp.float32),
            compiler_params=pltpu.CompilerParams(
                dimension_semantics=("arbitrary",)),
        )(x_unf, w_big, b_row)

        # (N*H, W*Cout) -> (N, H, W, Cout) -> NCHW
        return jnp.transpose(out.reshape(N, H, W, Cout),
                             (0, 3, 1, 2)).astype(x_nchw.dtype)

    return forward


def reference(x_nchw, weights, biases, ksizes):
    """Pure-JAX reference matching the PyTorch forward."""
    outs = []
    for i, (w, k) in enumerate(zip(weights, ksizes)):
        p = (k - 1) // 2
        o = lax.conv_general_dilated(
            x_nchw, w, window_strides=(1, 1), padding=[(p, p), (p, p)],
            dimension_numbers=("NCHW", "OIHW", "NCHW"),
            precision=lax.Precision.HIGHEST)
        outs.append(o + biases[i][None, :, None, None])
    return jnp.mean(jnp.stack(outs, axis=-1), axis=-1)


if __name__ == "__main__":
    N, Cin, Cout, H, W = 2, 4, 8, 16, 16
    ksizes = tuple(4 * i + 1 for i in range(NUM_KERNELS))   # 1, 5, 9, 13, 17, 21

    key = jax.random.PRNGKey(0)
    kx, *kws = jax.random.split(key, NUM_KERNELS + 1)

    x = jax.random.normal(kx, (N, Cin, H, W), dtype=jnp.float32)

    # kaiming_normal_(mode='fan_out', nonlinearity='relu'): std = sqrt(2 / (Cout*k*k))
    weights = []
    for i, k in enumerate(ksizes):
        std = (2.0 / (Cout * k * k)) ** 0.5
        weights.append(std * jax.random.normal(kws[i], (Cout, Cin, k, k),
                                               dtype=jnp.float32))
    biases = jnp.zeros((NUM_KERNELS, Cout), dtype=jnp.float32)  # init.constant_(0)

    block = make_inception_block_v3(weights, biases, ksizes, (H, W))
    out = jax.block_until_ready(block(x))
    ref = jax.block_until_ready(reference(x, weights, biases, ksizes))

    assert out.shape == (N, Cout, H, W), out.shape
    np.testing.assert_allclose(np.asarray(out), np.asarray(ref),
                               rtol=2e-2, atol=2e-2)
    print("KERNEL_OK")
</pallas_src>

<mosaic_0001>
module attributes {stable_mosaic.version = 11 : i64} {
  func.func @_fused_conv_kernel(%arg0: i32, %arg1: memref<32x3024xbf16, #tpu.memory_space<vmem>>, %arg2: memref<3024x128xbf16, #tpu.memory_space<vmem>>, %arg3: memref<1x128xf32, #tpu.memory_space<vmem>>, %arg4: memref<32x128xf32, #tpu.memory_space<vmem>>) attributes {dimension_semantics = [#tpu.dimension_semantics<arbitrary>], iteration_bounds = array<i64: 1>, scalar_prefetch = 0 : i64, scratch_operands = 0 : i64, tpu.core_type = #tpu.core_type<tc>, window_params = [{pipeline_mode = #tpu.pipeline_mode<synchronous>, transform_indices = @transform_0, window_bounds = array<i64: 32, 3024>}, {pipeline_mode = #tpu.pipeline_mode<synchronous>, transform_indices = @transform_1, window_bounds = array<i64: 3024, 128>}, {pipeline_mode = #tpu.pipeline_mode<synchronous>, transform_indices = @transform_2, window_bounds = array<i64: 1, 128>}, {pipeline_mode = #tpu.pipeline_mode<synchronous>, transform_indices = @transform_3, window_bounds = array<i64: 32, 128>}]} {
    %c0 = arith.constant 0 : index
    %c0_0 = arith.constant 0 : index
    %0 = vector.load %arg1[%c0, %c0_0] : memref<32x3024xbf16, #tpu.memory_space<vmem>>, vector<32x3024xbf16>
    %c0_1 = arith.constant 0 : index
    %c0_2 = arith.constant 0 : index
    %1 = vector.load %arg2[%c0_1, %c0_2] : memref<3024x128xbf16, #tpu.memory_space<vmem>>, vector<3024x128xbf16>
    %cst = arith.constant dense<0.000000e+00> : vector<32x128xf32>
    %2 = tpu.matmul %0, %1, %cst {dimension_numbers = #tpu.dot_dimension_numbers<[1], [0], [0], [1], [0, 0, 1, 1], [], []>} : vector<32x3024xbf16>, vector<3024x128xbf16>, vector<32x128xf32> -> vector<32x128xf32>
    %c0_3 = arith.constant 0 : index
    %c0_4 = arith.constant 0 : index
    %3 = vector.load %arg3[%c0_3, %c0_4] : memref<1x128xf32, #tpu.memory_space<vmem>>, vector<1x128xf32>
    %4 = vector.broadcast %3 : vector<1x128xf32> to vector<32x128xf32>
    %5 = arith.addf %2, %4 : vector<32x128xf32>
    %c0_5 = arith.constant 0 : index
    %c0_6 = arith.constant 0 : index
    %6 = vector.load %arg4[%c0_5, %c0_6] : memref<32x128xf32, #tpu.memory_space<vmem>>, vector<32x128xf32>
    tpu.vector_store %arg4[%c0_5, %c0_6], %5 {strides = array<i32>} : memref<32x128xf32, #tpu.memory_space<vmem>>, vector<32x128xf32>,
    return
  }
  func.func @transform_0(%arg0: i32) -> (i32, i32) {
    %c0_i32 = arith.constant 0 : i32
    %c0_i32_0 = arith.constant 0 : i32
    %c0_i32_1 = arith.constant 0 : i32
    return %c0_i32, %c0_i32_0 : i32, i32
  }
  func.func @transform_1(%arg0: i32) -> (i32, i32) {
    %c0_i32 = arith.constant 0 : i32
    %c0_i32_0 = arith.constant 0 : i32
    %c0_i32_1 = arith.constant 0 : i32
    return %c0_i32, %c0_i32_0 : i32, i32
  }
  func.func @transform_2(%arg0: i32) -> (i32, i32) {
    %c0_i32 = arith.constant 0 : i32
    %c0_i32_0 = arith.constant 0 : i32
    %c0_i32_1 = arith.constant 0 : i32
    return %c0_i32, %c0_i32_0 : i32, i32
  }
  func.func @transform_3(%arg0: i32) -> (i32, i32) {
    %c0_i32 = arith.constant 0 : i32
    %c0_i32_0 = arith.constant 0 : i32
    %c0_i32_1 = arith.constant 0 : i32
    return %c0_i32, %c0_i32_0 : i32, i32
  }
}

</mosaic_0001>

<bundles_post_ra>
// kernel: forward.1
= control target key start
LH: loop header
LB: loop body
LE: loop exit
PB: predicated region body
PF: predicated region fallthrough
CT: control target
= control target key end

     0   :  { %vm1817_vm0 = vcmask 654336   ;;  %s4377_s1 = inlined_call_operand.vmem [shape: bf16[3024,128], index: 1, kind: input, shape index: {}]   ;;  %s4378_s0 = inlined_call_operand.vmem [shape: bf16[32,3024], index: 0, kind: input, shape index: {}]   ;;  %s4379_s2 = inlined_call_operand.vmem [shape: f32[1,128], index: 2, kind: input, shape index: {}]   ;;  %s4380_s3 = inlined_call_operand.vmem [shape: f32[32,128], index: 3, kind: output, shape index: {}]  }
   0x1   :  { %v3293_v0 = vld [vmem:[%s4377_s1 + $0x38] sm:$0xff]  ;;  %v3292_v4 = vld [vmem:[%s4377_s1 + $0x30] sm:$0xff]  ;;  %v3291_v8 = vld [vmem:[%s4377_s1 + $0x28] sm:$0xff] }
   0x2   :  { %v3301_v1 = vld [vmem:[%s4377_s1 + $0x78] sm:$0xff]  ;;  %1824 = vmatpush.bf16.msra.mxu0 %v3293_v0  ;;  %v3300_v5 = vld [vmem:[%s4377_s1 + $0x70] sm:$0xff]  ;;  %v3299_v9 = vld [vmem:[%s4377_s1 + $0x68] sm:$0xff] }
   0x3   :  { %v3309_v2 = vld [vmem:[%s4377_s1 + $0xb8] sm:$0xff]  ;;  %1843 = vmatpush.bf16.msra.mxu1 %v3301_v1  ;;  %v3308_v6 = vld [vmem:[%s4377_s1 + $0xb0] sm:$0xff]  ;;  %v3307_v10 = vld [vmem:[%s4377_s1 + $0xa8] sm:$0xff] }
   0x4   :  { %v3317_v3 = vld [vmem:[%s4377_s1 + $0xf8] sm:$0xff]  ;;  %1862 = vmatpush.bf16.msra.mxu2 %v3309_v2  ;;  %v3316_v7 = vld [vmem:[%s4377_s1 + $0xf0] sm:$0xff]  ;;  %v3315_v11 = vld [vmem:[%s4377_s1 + $0xe8] sm:$0xff] }
   0x5   :  { %1881 = vmatpush.bf16.msra.mxu3 %v3317_v3  ;;  %v3290_v12 = vld [vmem:[%s4377_s1 + $0x20] sm:$0xff]  ;;  %v3289_v16 = vld [vmem:[%s4377_s1 + $0x18] sm:$0xff]  ;;  %v3288_v20 = vld [vmem:[%s4377_s1 + $0x10] sm:$0xff] }
   0x6   :  { %1825 = vmatpush.bf16.msra.mxu0 %v3292_v4  ;;  %v3298_v13 = vld [vmem:[%s4377_s1 + $0x60] sm:$0xff]  ;;  %v3297_v17 = vld [vmem:[%s4377_s1 + $0x58] sm:$0xff]  ;;  %v3296_v21 = vld [vmem:[%s4377_s1 + $0x50] sm:$0xff] }
   0x7   :  { %1844 = vmatpush.bf16.msra.mxu1 %v3300_v5  ;;  %v3306_v14 = vld [vmem:[%s4377_s1 + $0xa0] sm:$0xff]  ;;  %v3305_v18 = vld [vmem:[%s4377_s1 + $0x98] sm:$0xff]  ;;  %v3304_v22 = vld [vmem:[%s4377_s1 + $0x90] sm:$0xff] }
   0x8   :  { %1863 = vmatpush.bf16.msra.mxu2 %v3308_v6  ;;  %v3314_v15 = vld [vmem:[%s4377_s1 + $0xe0] sm:$0xff]  ;;  %v3313_v19 = vld [vmem:[%s4377_s1 + $0xd8] sm:$0xff]  ;;  %v3312_v23 = vld [vmem:[%s4377_s1 + $0xd0] sm:$0xff] }
   0x9   :  { %1882 = vmatpush.bf16.msra.mxu3 %v3316_v7  ;;  %v3287_v24 = vld [vmem:[%s4377_s1 + $0x8] sm:$0xff]  ;;  %v3286_v28 = vld [vmem:[%s4377_s1] sm:$0xff]  ;;  %v3341_v40 = vld [vmem:[%s4377_s1 + $0x1b8] sm:$0xff] }
   0xa   :  { %1826 = vmatpush.bf16.msra.mxu0 %v3291_v8  ;;  %v3295_v25 = vld [vmem:[%s4377_s1 + $0x48] sm:$0xff]  ;;  %v3294_v29 = vld [vmem:[%s4377_s1 + $0x40] sm:$0xff]  ;;  %v3325_v41 = vld [vmem:[%s4377_s1 + $0x138] sm:$0xff] }
   0xb   :  { %1845 = vmatpush.bf16.msra.mxu1 %v3299_v9  ;;  %v3303_v26 = vld [vmem:[%s4377_s1 + $0x88] sm:$0xff]  ;;  %v3302_v30 = vld [vmem:[%s4377_s1 + $0x80] sm:$0xff]  ;;  %v3333_v46 = vld [vmem:[%s4377_s1 + $0x178] sm:$0xff] }
   0xc   :  { %1864 = vmatpush.bf16.msra.mxu2 %v3307_v10  ;;  %v3311_v27 = vld [vmem:[%s4377_s1 + $0xc8] sm:$0xff]  ;;  %v3310_v31 = vld [vmem:[%s4377_s1 + $0xc0] sm:$0xff]  ;;  %v3349_v47 = vld [vmem:[%s4377_s1 + $0x1f8] sm:$0xff] }
   0xd   :  { %1883 = vmatpush.bf16.msra.mxu3 %v3315_v11  ;;  %v2290_v32 = vld [vmem:[%s4378_s0] sm:$0xf]  ;;  %v3238_v34 = vld [vmem:[%s4378_s0 + $0x4] sm:$0xf]  ;;  %v2298_v36 = vld [vmem:[%s4378_s0 + $0x8] sm:$0xf] }
   0xe   :  { %1827 = vmatpush.bf16.msra.mxu0 %v3290_v12  ;;  %v3250_v33 = vld [vmem:[%s4378_s0 + $0x5c] sm:$0xf0]  ;;  %v2292_v35 = vld [vmem:[%s4378_s0 + $0x60] sm:$0xf0]  ;;  %v3251_v37 = vld [vmem:[%s4378_s0 + $0x64] sm:$0xf0] }
   0xf   :  { %1846 = vmatpush.bf16.msra.mxu1 %v3298_v13  ;;  %v3239_v38 = vld [vmem:[%s4378_s0 + $0xc] sm:$0xf]  ;;  %v2291_v42 = vor.u32 %v3250_v33, %v2290_v32  ;;  %v2295_v43 = vor.u32 %v3238_v34, %v2292_v35  ;;  %v2299_v44 = vor.u32 %v3251_v37, %v2298_v36  ;;  %v3340_v48 = vld [vmem:[%s4377_s1 + $0x1b0] sm:$0xff]  ;;  %v3338_v56 = vld [vmem:[%s4377_s1 + $0x1a0] sm:$0xff] }
  0x10   :  { %1865 = vmatpush.bf16.msra.mxu2 %v3306_v14  ;;  %v2300_v39 = vld [vmem:[%s4378_s0 + $0x68] sm:$0xf0]  ;;  %v3324_v49 = vld [vmem:[%s4377_s1 + $0x130] sm:$0xff]  ;;  %v3322_v57 = vld [vmem:[%s4377_s1 + $0x120] sm:$0xff] }
  0x11   :  { %1884 = vmatpush.bf16.msra.mxu3 %v3314_v15  ;;  %v2303_v45 = vor.u32 %v3239_v38, %v2300_v39  ;;  %v3332_v50 = vld [vmem:[%s4377_s1 + $0x170] sm:$0xff]  ;;  %v3339_v52 = vld [vmem:[%s4377_s1 + $0x1a8] sm:$0xff]  ;;  %v3330_v58 = vld [vmem:[%s4377_s1 + $0x160] sm:$0xff] }
  0x12   :  { %1828 = vmatpush.bf16.msra.mxu0 %v3289_v16  ;;  %v3348_v51 = vld [vmem:[%s4377_s1 + $0x1f0] sm:$0xff]  ;;  %v3323_v53 = vld [vmem:[%s4377_s1 + $0x128] sm:$0xff]  ;;  %v3346_v59 = vld [vmem:[%s4377_s1 + $0x1e0] sm:$0xff] }
  0x13   :  { %1847 = vmatpush.bf16.msra.mxu1 %v3297_v17  ;;  %v3331_v54 = vld [vmem:[%s4377_s1 + $0x168] sm:$0xff]  ;;  %v2386_v60 = vld [vmem:[%s4378_s0 + $0xc0] sm:$0xf]  ;;  %v3262_v62 = vld [vmem:[%s4378_s0 + $0xc4] sm:$0xf] }
  0x14   :  { %1866 = vmatpush.bf16.msra.mxu2 %v3305_v18  ;;  %v3347_v55 = vld [vmem:[%s4377_s1 + $0x1e8] sm:$0xff]  ;;  %v3274_v61 = vld [vmem:[%s4378_s0 + $0x11c] sm:$0xf0]  ;;  %v2388_v63 = vld [vmem:[%s4378_s0 + $0x120] sm:$0xf0] }
  0x15   :  { %1885 = vmatpush.bf16.msra.mxu3 %v3313_v19  ;;  %v2394_v0 = vld [vmem:[%s4378_s0 + $0xc8] sm:$0xf]  ;;  %v3263_v2 = vld [vmem:[%s4378_s0 + $0xcc] sm:$0xf]  ;;  %v3337_v4 = vld [vmem:[%s4377_s1 + $0x198] sm:$0xff]  ;;  %v2387_v6 = vor.u32 %v3274_v61, %v2386_v60  ;;  %v2391_v7 = vor.u32 %v3262_v62, %v2388_v63 }
  0x16   :  { %1829 = vmatpush.bf16.msra.mxu0 %v3288_v20  ;;  %v3275_v1 = vld [vmem:[%s4378_s0 + $0x124] sm:$0xf0]  ;;  %v2396_v3 = vld [vmem:[%s4378_s0 + $0x128] sm:$0xf0]  ;;  %v3321_v5 = vld [vmem:[%s4377_s1 + $0x118] sm:$0xff] }
  0x17   :  { %1848 = vmatpush.bf16.msra.mxu1 %v3296_v21  ;;  %v2395_v8 = vor.u32 %v3275_v1, %v2394_v0  ;;  %v2399_v9 = vor.u32 %v3263_v2, %v2396_v3  ;;  %v3329_v10 = vld [vmem:[%s4377_s1 + $0x158] sm:$0xff]  ;;  %v3336_v12 = vld [vmem:[%s4377_s1 + $0x190] sm:$0xff]  ;;  %v3335_v16 = vld [vmem:[%s4377_s1 + $0x188] sm:$0xff] }
  0x18   :  { %1867 = vmatpush.bf16.msra.mxu2 %v3304_v22  ;;  %v3345_v11 = vld [vmem:[%s4377_s1 + $0x1d8] sm:$0xff]  ;;  %v3320_v13 = vld [vmem:[%s4377_s1 + $0x110] sm:$0xff]  ;;  %v3319_v17 = vld [vmem:[%s4377_s1 + $0x108] sm:$0xff] }
  0x19   :  { %1886 = vmatpush.bf16.msra.mxu3 %v3312_v23  ;;  %v3328_v14 = vld [vmem:[%s4377_s1 + $0x150] sm:$0xff]  ;;  %v3327_v18 = vld [vmem:[%s4377_s1 + $0x148] sm:$0xff]  ;;  %v3334_v20 = vld [vmem:[%s4377_s1 + $0x180] sm:$0xff] }
  0x1a   :  { %1830 = vmatpush.bf16.msra.mxu0 %v3287_v24  ;;  %v3344_v15 = vld [vmem:[%s4377_s1 + $0x1d0] sm:$0xff]  ;;  %v3343_v19 = vld [vmem:[%s4377_s1 + $0x1c8] sm:$0xff]  ;;  %v3318_v21 = vld [vmem:[%s4377_s1 + $0x100] sm:$0xff] }
  0x1b   :  { %1849 = vmatpush.bf16.msra.mxu1 %v3295_v25  ;;  %v3326_v22 = vld [vmem:[%s4377_s1 + $0x140] sm:$0xff]  ;;  %v2306_v24 = vld [vmem:[%s4378_s0 + $0x10] sm:$0xf]  ;;  %v3373_v25 = vld [vmem:[%s4377_s1 + $0x2b8] sm:$0xff] }
  0x1c   :  { %1868 = vmatpush.bf16.msra.mxu2 %v3303_v26  ;;  %v3342_v23 = vld [vmem:[%s4377_s1 + $0x1c0] sm:$0xff]  ;;  %v3357_v26 = vld [vmem:[%s4377_s1 + $0x238] sm:$0xff]  ;;  %v3372_v37 = vld [vmem:[%s4377_s1 + $0x2b0] sm:$0xff] }
  0x1d   :  { %1887 = vmatpush.bf16.msra.mxu3 %v3311_v27  ;;  %v3252_v27 = vld [vmem:[%s4378_s0 + $0x6c] sm:$0xf0]  ;;  %v3241_v32 = vld [vmem:[%s4378_s0 + $0x1c] sm:$0xf] }
  0x1e   :  { %1831 = vmatpush.bf16.msra.mxu0 %v3286_v28  ;;  %v3240_v28 = vld [vmem:[%s4378_s0 + $0x14] sm:$0xf]  ;;  %v2316_v33 = vld [vmem:[%s4378_s0 + $0x78] sm:$0xf0]  ;;  %v2307_v36 = vor.u32 %v3252_v27, %v2306_v24  ;;  %v2324_v24 = vld [vmem:[%s4378_s0 + $0x80] sm:$0xf0] }
  0x1f   :  { %1850 = vmatpush.bf16.msra.mxu1 %v3294_v29  ;;  %v2308_v29 = vld [vmem:[%s4378_s0 + $0x70] sm:$0xf0]  ;;  %v3365_v34 = vld [vmem:[%s4377_s1 + $0x278] sm:$0xff]  ;;  %v3243_v27 = vld [vmem:[%s4378_s0 + $0x2c] sm:$0xf] }
  0x20   :  { %1869 = vmatpush.bf16.msra.mxu2 %v3302_v30  ;;  %v2314_v30 = vld [vmem:[%s4378_s0 + $0x18] sm:$0xf]  ;;  %v2311_v38 = vor.u32 %v3240_v28, %v2308_v29  ;;  %v2412_v61 = vld [vmem:[%s4378_s0 + $0x138] sm:$0xf0]  ;;  %v3368_v1 = vld [vmem:[%s4377_s1 + $0x290] sm:$0xff] }
  0x21   :  { %1888 = vmatpush.bf16.msra.mxu3 %v3310_v31  ;;  %1832 = vmatmul.bf16.vlgmr.msra.gmra.mxu0 %v2291_v42  ;;  %v3253_v31 = vld [vmem:[%s4378_s0 + $0x74] sm:$0xf0]  ;;  %v3364_v42 = vld [vmem:[%s4377_s1 + $0x270] sm:$0xff]  ;;  %v2332_v28 = vld [vmem:[%s4378_s0 + $0x88] sm:$0xf0] }
  0x22   :  { %1900 = vmatpush.bf16.msrb.mxu0 %v3325_v41  ;;  %1851 = vmatmul.bf16.vlgmr.msra.gmra.mxu1 %v2295_v43  ;;  %v3381_v35 = vld [vmem:[%s4377_s1 + $0x2f8] sm:$0xff]  ;;  %v2315_v39 = vor.u32 %v3253_v31, %v2314_v30  ;;  %v3356_v41 = vld [vmem:[%s4377_s1 + $0x230] sm:$0xff] }
  0x23   :  { %1870 = vmatmul.bf16.vlgmr.msra.gmra.mxu2 %v2299_v44  ;;  %1919 = vmatpush.bf16.msrb.mxu1 %v3333_v46  ;;  %v3380_v43 = vld [vmem:[%s4377_s1 + $0x2f0] sm:$0xff]  ;;  %v3371_v44 = vld [vmem:[%s4377_s1 + $0x2a8] sm:$0xff]  ;;  %v3353_v60 = vld [vmem:[%s4377_s1 + $0x218] sm:$0xff] }
  0x24   :  { %1938 = vmatpush.bf16.msrb.mxu2 %v3341_v40  ;;  %1889 = vmatmul.bf16.vlgmr.msra.gmra.mxu3 %v2303_v45  ;;  %v2319_v40 = vor.u32 %v3241_v32, %v2316_v33  ;;  %v3355_v45 = vld [vmem:[%s4377_s1 + $0x228] sm:$0xff]  ;;  %v3361_v62 = vld [vmem:[%s4377_s1 + $0x258] sm:$0xff]  ;;  %v3396_v30 = vld [vmem:[%s4377_s1 + $0x370] sm:$0xff]  ;;  %v2335_v33 = vor.u32 %v3243_v27, %v2332_v28 }
  0x25   :  { %1957 = vmatpush.bf16.msrb.mxu3 %v3349_v47  ;;  %v3363_v46 = vld [vmem:[%s4377_s1 + $0x268] sm:$0xff]  ;;  %v3377_v63 = vld [vmem:[%s4377_s1 + $0x2d8] sm:$0xff] }
  0x26   :  { %1901 = vmatpush.bf16.msrb.mxu0 %v3324_v49  ;;  %v3379_v47 = vld [vmem:[%s4377_s1 + $0x2e8] sm:$0xff]  ;;  %v3354_v49 = vld [vmem:[%s4377_s1 + $0x220] sm:$0xff] }
  0x27   :  { %1920 = vmatpush.bf16.msrb.mxu1 %v3332_v50  ;;  %v3362_v50 = vld [vmem:[%s4377_s1 + $0x260] sm:$0xff]  ;;  %v3435_v28 = vld [vmem:[%s4377_s1 + $0x4a8] sm:$0xff] }
  0x28   :  { %1939 = vmatpush.bf16.msrb.mxu2 %v3340_v48  ;;  %v3370_v48 = vld [vmem:[%s4377_s1 + $0x2a0] sm:$0xff] }
  0x29   :  { %1958 = vmatpush.bf16.msrb.mxu3 %v3348_v51  ;;  %v3378_v51 = vld [vmem:[%s4377_s1 + $0x2e0] sm:$0xff] }
  0x2a   :  { %1902 = vmatpush.bf16.msrb.mxu0 %v3323_v53  ;;  %v3276_v53 = vld [vmem:[%s4378_s0 + $0x12c] sm:$0xf0] }
  0x2b   :  { %1921 = vmatpush.bf16.msrb.mxu1 %v3331_v54  ;;  %v3369_v54 = vld [vmem:[%s4377_s1 + $0x298] sm:$0xff] }
  0x2c   :  { %1940 = vmatpush.bf16.msrb.mxu2 %v3339_v52  ;;  %v2402_v52 = vld [vmem:[%s4378_s0 + $0xd0] sm:$0xf] }
  0x2d   :  { %1959 = vmatpush.bf16.msrb.mxu3 %v3347_v55  ;;  %v3264_v55 = vld [vmem:[%s4378_s0 + $0xd4] sm:$0xf]  ;;  %v2403_v0 = vor.u32 %v3276_v53, %v2402_v52  ;;  %v3267_v52 = vld [vmem:[%s4378_s0 + $0xec] sm:$0xf]  ;;  %v3385_v53 = vld [vmem:[%s4377_s1 + $0x318] sm:$0xff] }
  0x2e   :  { %1903 = vmatpush.bf16.msrb.mxu0 %v3322_v57  ;;  %v2410_v57 = vld [vmem:[%s4378_s0 + $0xd8] sm:$0xf] }
  0x2f   :  { %1922 = vmatpush.bf16.msrb.mxu1 %v3330_v58  ;;  %v3277_v58 = vld [vmem:[%s4378_s0 + $0x134] sm:$0xf0] }
  0x30   :  { %1941 = vmatpush.bf16.msrb.mxu2 %v3338_v56  ;;  %v2404_v56 = vld [vmem:[%s4378_s0 + $0x130] sm:$0xf0]  ;;  %v2411_v3 = vor.u32 %v3277_v58, %v2410_v57 }
  0x31   :  { %1960 = vmatpush.bf16.msrb.mxu3 %v3346_v59  ;;  %1837 = vmatmul.bf16.gmra.mxu0 %v2387_v6  ;;  %v3265_v59 = vld [vmem:[%s4378_s0 + $0xdc] sm:$0xf]  ;;  %v2407_v2 = vor.u32 %v3264_v55, %v2404_v56  ;;  %v3360_v6 = vld [vmem:[%s4377_s1 + $0x250] sm:$0xff] }
  0x32   :  { %1904 = vmatpush.bf16.msrb.mxu0 %v3321_v5  ;;  %1856 = vmatmul.bf16.gmra.mxu1 %v2391_v7  ;;  %v3352_v5 = vld [vmem:[%s4377_s1 + $0x210] sm:$0xff]  ;;  %v3409_v55 = vld [vmem:[%s4377_s1 + $0x3d8] sm:$0xff] }
  0x33   :  { %1875 = vmatmul.bf16.gmra.mxu2 %v2395_v8  ;;  %1923 = vmatpush.bf16.msrb.mxu1 %v3329_v10  ;;  %v3376_v7 = vld [vmem:[%s4377_s1 + $0x2d0] sm:$0xff]  ;;  %v3367_v8 = vld [vmem:[%s4377_s1 + $0x288] sm:$0xff] }
  0x34   :  { %1942 = vmatpush.bf16.msrb.mxu2 %v3337_v4  ;;  %1894 = vmatmul.bf16.gmra.mxu3 %v2399_v9  ;;  %v2415_v4 = vor.u32 %v3265_v59, %v2412_v61  ;;  %v3351_v9 = vld [vmem:[%s4377_s1 + $0x208] sm:$0xff]  ;;  %v3400_v56 = vld [vmem:[%s4377_s1 + $0x390] sm:$0xff] }
  0x35   :  { %1961 = vmatpush.bf16.msrb.mxu3 %v3345_v11  ;;  %v3359_v10 = vld [vmem:[%s4377_s1 + $0x248] sm:$0xff]  ;;  %v3392_v58 = vld [vmem:[%s4377_s1 + $0x350] sm:$0xff] }
  0x36   :  { %1905 = vmatpush.bf16.msrb.mxu0 %v3320_v13  ;;  %v3375_v11 = vld [vmem:[%s4377_s1 + $0x2c8] sm:$0xff]  ;;  %v3405_v13 = vld [vmem:[%s4377_s1 + $0x3b8] sm:$0xff] }
  0x37   :  { %1924 = vmatpush.bf16.msrb.mxu1 %v3328_v14  ;;  %v3350_v14 = vld [vmem:[%s4377_s1 + $0x200] sm:$0xff] }
  0x38   :  { %1943 = vmatpush.bf16.msrb.mxu2 %v3336_v12  ;;  %v3366_v12 = vld [vmem:[%s4377_s1 + $0x280] sm:$0xff] }
  0x39   :  { %1962 = vmatpush.bf16.msrb.mxu3 %v3344_v15  ;;  %v3358_v15 = vld [vmem:[%s4377_s1 + $0x240] sm:$0xff] }
  0x3a   :  { %1906 = vmatpush.bf16.msrb.mxu0 %v3319_v17  ;;  %v2322_v17 = vld [vmem:[%s4378_s0 + $0x20] sm:$0xf] }
  0x3b   :  { %1925 = vmatpush.bf16.msrb.mxu1 %v3327_v18  ;;  %v3254_v18 = vld [vmem:[%s4378_s0 + $0x7c] sm:$0xf0] }
  0x3c   :  { %1944 = vmatpush.bf16.msrb.mxu2 %v3335_v16  ;;  %v3374_v16 = vld [vmem:[%s4377_s1 + $0x2c0] sm:$0xff]  ;;  %v2323_v29 = vor.u32 %v3254_v18, %v2322_v17  ;;  %v2340_v17 = vld [vmem:[%s4378_s0 + $0x90] sm:$0xf0]  ;;  %v2346_v18 = vld [vmem:[%s4378_s0 + $0x38] sm:$0xf] }
  0x3d   :  { %1963 = vmatpush.bf16.msrb.mxu3 %v3343_v19  ;;  %v3389_v19 = vld [vmem:[%s4377_s1 + $0x338] sm:$0xff] }
  0x3e   :  { %1907 = vmatpush.bf16.msrb.mxu0 %v3318_v21  ;;  %v3242_v21 = vld [vmem:[%s4378_s0 + $0x24] sm:$0xf] }
  0x3f   :  { %1926 = vmatpush.bf16.msrb.mxu1 %v3326_v22  ;;  %v3413_v22 = vld [vmem:[%s4377_s1 + $0x3f8] sm:$0xff]  ;;  %v2327_v31 = vor.u32 %v3242_v21, %v2324_v24  ;;  %v3444_v24 = vld [vmem:[%s4377_s1 + $0x4f0] sm:$0xff] }
  0x40   :  { %1945 = vmatpush.bf16.msrb.mxu2 %v3334_v20  ;;  %v3397_v20 = vld [vmem:[%s4377_s1 + $0x378] sm:$0xff] }
  0x41   :  { %1964 = vmatpush.bf16.msrb.mxu3 %v3342_v23  ;;  %1908 = vmatmul.bf16.vlgmr.msrb.gmra.mxu0 %v2307_v36  ;;  %v3404_v23 = vld [vmem:[%s4377_s1 + $0x3b0] sm:$0xff]  ;;  %v3403_v36 = vld [vmem:[%s4377_s1 + $0x3a8] sm:$0xff]  ;;  %v2348_v21 = vld [vmem:[%s4378_s0 + $0x98] sm:$0xf0] }
  0x42   :  { %1976 = vmatpush.bf16.msra.mxu0 %v3357_v26  ;;  %1927 = vmatmul.bf16.vlgmr.msrb.gmra.mxu1 %v2311_v38  ;;  %v3255_v26 = vld [vmem:[%s4378_s0 + $0x84] sm:$0xf0] }
  0x43   :  { %1995 = vmatpush.bf16.msra.mxu1 %v3365_v34  ;;  %1946 = vmatmul.bf16.vlgmr.msrb.gmra.mxu2 %v2315_v39  ;;  %v3388_v34 = vld [vmem:[%s4377_s1 + $0x330] sm:$0xff]  ;;  %v3387_v38 = vld [vmem:[%s4377_s1 + $0x328] sm:$0xff] }
  0x44   :  { %2014 = vmatpush.bf16.msra.mxu2 %v3373_v25  ;;  %1965 = vmatmul.bf16.vlgmr.msrb.gmra.mxu3 %v2319_v40  ;;  %v2330_v25 = vld [vmem:[%s4378_s0 + $0x28] sm:$0xf]  ;;  %v3402_v40 = vld [vmem:[%s4377_s1 + $0x3a0] sm:$0xff] }
  0x45   :  { %2033 = vmatpush.bf16.msra.mxu3 %v3381_v35  ;;  %v2331_v32 = vor.u32 %v3255_v26, %v2330_v25  ;;  %v3412_v35 = vld [vmem:[%s4377_s1 + $0x3f0] sm:$0xff]  ;;  %v3411_v39 = vld [vmem:[%s4377_s1 + $0x3e8] sm:$0xff] }
  0x46   :  { %1977 = vmatpush.bf16.msra.mxu0 %v3356_v41  ;;  %v3394_v41 = vld [vmem:[%s4377_s1 + $0x360] sm:$0xff] }
  0x47   :  { %1996 = vmatpush.bf16.msra.mxu1 %v3364_v42  ;;  %v3386_v42 = vld [vmem:[%s4377_s1 + $0x320] sm:$0xff] }
  0x48   :  { %2015 = vmatpush.bf16.msra.mxu2 %v3372_v37  ;;  %v3395_v37 = vld [vmem:[%s4377_s1 + $0x368] sm:$0xff] }
  0x49   :  { %2034 = vmatpush.bf16.msra.mxu3 %v3380_v43  ;;  %v3410_v43 = vld [vmem:[%s4377_s1 + $0x3e0] sm:$0xff] }
  0x4a   :  { %1978 = vmatpush.bf16.msra.mxu0 %v3355_v45  ;;  %v2418_v45 = vld [vmem:[%s4378_s0 + $0xe0] sm:$0xf] }
  0x4b   :  { %1997 = vmatpush.bf16.msra.mxu1 %v3363_v46  ;;  %v3278_v46 = vld [vmem:[%s4378_s0 + $0x13c] sm:$0xf0] }
  0x4c   :  { %2016 = vmatpush.bf16.msra.mxu2 %v3371_v44  ;;  %v3401_v44 = vld [vmem:[%s4377_s1 + $0x398] sm:$0xff]  ;;  %v2419_v57 = vor.u32 %v3278_v46, %v2418_v45 }
  0x4d   :  { %2035 = vmatpush.bf16.msra.mxu3 %v3379_v47  ;;  %v3393_v47 = vld [vmem:[%s4377_s1 + $0x358] sm:$0xff] }
  0x4e   :  { %1979 = vmatpush.bf16.msra.mxu0 %v3354_v49  ;;  %v2420_v49 = vld [vmem:[%s4378_s0 + $0x140] sm:$0xf0]  ;;  %v3281_v45 = vld [vmem:[%s4378_s0 + $0x154] sm:$0xf0]  ;;  %v3269_v46 = vld [vmem:[%s4378_s0 + $0xfc] sm:$0xf] }
  0x4f   :  { %1998 = vmatpush.bf16.msra.mxu1 %v3362_v50  ;;  %v2426_v50 = vld [vmem:[%s4378_s0 + $0xe8] sm:$0xf] }
  0x50   :  { %2017 = vmatpush.bf16.msra.mxu2 %v3370_v48  ;;  %v3266_v48 = vld [vmem:[%s4378_s0 + $0xe4] sm:$0xf] }
  0x51   :  { %2036 = vmatpush.bf16.msra.mxu3 %v3378_v51  ;;  %1913 = vmatmul.bf16.gmra.mxu0 %v2403_v0  ;;  %v3279_v51 = vld [vmem:[%s4378_s0 + $0x144] sm:$0xf0]  ;;  %v2423_v59 = vor.u32 %v3266_v48, %v2420_v49  ;;  %v2444_v48 = vld [vmem:[%s4378_s0 + $0x158] sm:$0xf0]  ;;  %v3416_v49 = vld [vmem:[%s4377_s1 + $0x410] sm:$0xff] }
  0x52   :  { %1980 = vmatpush.bf16.msra.mxu0 %v3353_v60  ;;  %1932 = vmatmul.bf16.gmra.mxu1 %v2407_v2  ;;  %v2427_v60 = vor.u32 %v3279_v51, %v2426_v50  ;;  %v3399_v0 = vld [vmem:[%s4377_s1 + $0x388] sm:$0xff]  ;;  %v3424_v50 = vld [vmem:[%s4377_s1 + $0x450] sm:$0xff] }
  0x53   :  { %1999 = vmatpush.bf16.msra.mxu1 %v3361_v62  ;;  %1951 = vmatmul.bf16.gmra.mxu2 %v2411_v3  ;;  %v3384_v62 = vld [vmem:[%s4377_s1 + $0x310] sm:$0xff]  ;;  %v3383_v2 = vld [vmem:[%s4377_s1 + $0x308] sm:$0xff] }
  0x54   :  { %2018 = vmatpush.bf16.msra.mxu2 %v3369_v54  ;;  %1970 = vmatmul.bf16.gmra.mxu3 %v2415_v4  ;;  %v2428_v54 = vld [vmem:[%s4378_s0 + $0x148] sm:$0xf0]  ;;  %v3398_v4 = vld [vmem:[%s4377_s1 + $0x380] sm:$0xff] }
  0x55   :  { %2037 = vmatpush.bf16.msra.mxu3 %v3377_v63  ;;  %v2431_v61 = vor.u32 %v3267_v52, %v2428_v54  ;;  %v3408_v63 = vld [vmem:[%s4377_s1 + $0x3d0] sm:$0xff]  ;;  %v3407_v3 = vld [vmem:[%s4377_s1 + $0x3c8] sm:$0xff] }
  0x56   :  { %1981 = vmatpush.bf16.msra.mxu0 %v3352_v5  ;;  %v3390_v5 = vld [vmem:[%s4377_s1 + $0x340] sm:$0xff]  ;;  %v3440_v52 = vld [vmem:[%s4377_s1 + $0x4d0] sm:$0xff] }
  0x57   :  { %2000 = vmatpush.bf16.msra.mxu1 %v3360_v6  ;;  %v3437_v6 = vld [vmem:[%s4377_s1 + $0x4b8] sm:$0xff] }
  0x58   :  { %2019 = vmatpush.bf16.msra.mxu2 %v3368_v1  ;;  %v3391_v1 = vld [vmem:[%s4377_s1 + $0x348] sm:$0xff] }
  0x59   :  { %2038 = vmatpush.bf16.msra.mxu3 %v3376_v7  ;;  %v3429_v7 = vld [vmem:[%s4377_s1 + $0x478] sm:$0xff] }
  0x5a   :  { %1982 = vmatpush.bf16.msra.mxu0 %v3351_v9  ;;  %v3406_v9 = vld [vmem:[%s4377_s1 + $0x3c0] sm:$0xff] }
  0x5b   :  { %2001 = vmatpush.bf16.msra.mxu1 %v3359_v10  ;;  %v3421_v10 = vld [vmem:[%s4377_s1 + $0x438] sm:$0xff] }
  0x5c   :  { %2020 = vmatpush.bf16.msra.mxu2 %v3367_v8  ;;  %v3382_v8 = vld [vmem:[%s4377_s1 + $0x300] sm:$0xff] }
  0x5d   :  { %2039 = vmatpush.bf16.msra.mxu3 %v3375_v11  ;;  %v2338_v11 = vld [vmem:[%s4378_s0 + $0x30] sm:$0xf] }
  0x5e   :  { %1983 = vmatpush.bf16.msra.mxu0 %v3350_v14  ;;  %v3256_v14 = vld [vmem:[%s4378_s0 + $0x8c] sm:$0xf0] }
  0x5f   :  { %2002 = vmatpush.bf16.msra.mxu1 %v3358_v15  ;;  %v3244_v15 = vld [vmem:[%s4378_s0 + $0x34] sm:$0xf] }
  0x60   :  { %2021 = vmatpush.bf16.msra.mxu2 %v3366_v12  ;;  %v3445_v12 = vld [vmem:[%s4377_s1 + $0x4f8] sm:$0xff]  ;;  %v2343_v25 = vor.u32 %v3244_v15, %v2340_v17  ;;  %v3247_v15 = vld [vmem:[%s4378_s0 + $0x4c] sm:$0xf] }
  0x61   :  { %2040 = vmatpush.bf16.msra.mxu3 %v3374_v16  ;;  %1984 = vmatmul.bf16.vlgmr.msra.gmra.mxu0 %v2323_v29  ;;  %v3428_v16 = vld [vmem:[%s4377_s1 + $0x470] sm:$0xff]  ;;  %v3419_v29 = vld [vmem:[%s4377_s1 + $0x428] sm:$0xff] }
  0x62   :  { %2052 = vmatpush.bf16.msrb.mxu0 %v3389_v19  ;;  %2003 = vmatmul.bf16.vlgmr.msra.gmra.mxu1 %v2327_v31  ;;  %v3257_v19 = vld [vmem:[%s4378_s0 + $0x94] sm:$0xf0]  ;;  %v3443_v31 = vld [vmem:[%s4377_s1 + $0x4e8] sm:$0xff] }
  0x63   :  { %2071 = vmatpush.bf16.msrb.mxu1 %v3397_v20  ;;  %2022 = vmatmul.bf16.vlgmr.msra.gmra.mxu2 %v2331_v32  ;;  %v3245_v20 = vld [vmem:[%s4378_s0 + $0x3c] sm:$0xf]  ;;  %v2347_v26 = vor.u32 %v3257_v19, %v2346_v18  ;;  %v3434_v32 = vld [vmem:[%s4377_s1 + $0x4a0] sm:$0xff]  ;;  %v3467_v18 = vld [vmem:[%s4377_s1 + $0x5a8] sm:$0xff] }
  0x64   :  { %2090 = vmatpush.bf16.msrb.mxu2 %v3405_v13  ;;  %2041 = vmatmul.bf16.vlgmr.msra.gmra.mxu3 %v2335_v33  ;;  %v3436_v13 = vld [vmem:[%s4377_s1 + $0x4b0] sm:$0xff]  ;;  %v2351_v27 = vor.u32 %v3245_v20, %v2348_v21  ;;  %v3418_v33 = vld [vmem:[%s4377_s1 + $0x420] sm:$0xff] }
  0x65   :  { %2109 = vmatpush.bf16.msrb.mxu3 %v3413_v22  ;;  %v3420_v22 = vld [vmem:[%s4377_s1 + $0x430] sm:$0xff] }
  0x66   :  { %2053 = vmatpush.bf16.msrb.mxu0 %v3388_v34  ;;  %v3426_v34 = vld [vmem:[%s4377_s1 + $0x460] sm:$0xff] }
  0x67   :  { %2072 = vmatpush.bf16.msrb.mxu1 %v3396_v30  ;;  %v3427_v30 = vld [vmem:[%s4377_s1 + $0x468] sm:$0xff] }
  0x68   :  { %2091 = vmatpush.bf16.msrb.mxu2 %v3404_v23  ;;  %v2339_v23 = vor.u32 %v3256_v14, %v2338_v11  ;;  %v3460_v11 = vld [vmem:[%s4377_s1 + $0x570] sm:$0xff]  ;;  %v3473_v14 = vld [vmem:[%s4377_s1 + $0x5d8] sm:$0xff] }
  0x69   :  { %2110 = vmatpush.bf16.msrb.mxu3 %v3412_v35  ;;  %v3442_v35 = vld [vmem:[%s4377_s1 + $0x4e0] sm:$0xff] }
  0x6a   :  { %2054 = vmatpush.bf16.msrb.mxu0 %v3387_v38  ;;  %v3425_v38 = vld [vmem:[%s4377_s1 + $0x458] sm:$0xff] }
  0x6b   :  { %2073 = vmatpush.bf16.msrb.mxu1 %v3395_v37  ;;  %v3417_v37 = vld [vmem:[%s4377_s1 + $0x418] sm:$0xff] }
  0x6c   :  { %2092 = vmatpush.bf16.msrb.mxu2 %v3403_v36  ;;  %v3433_v36 = vld [vmem:[%s4377_s1 + $0x498] sm:$0xff] }
  0x6d   :  { %2111 = vmatpush.bf16.msrb.mxu3 %v3411_v39  ;;  %v2434_v39 = vld [vmem:[%s4378_s0 + $0xf0] sm:$0xf] }
  0x6e   :  { %2055 = vmatpush.bf16.msrb.mxu0 %v3386_v42  ;;  %v3268_v42 = vld [vmem:[%s4378_s0 + $0xf4] sm:$0xf] }
  0x6f   :  { %2074 = vmatpush.bf16.msrb.mxu1 %v3394_v41  ;;  %v3441_v41 = vld [vmem:[%s4377_s1 + $0x4d8] sm:$0xff] }
  0x70   :  { %2093 = vmatpush.bf16.msrb.mxu2 %v3402_v40  ;;  %v3280_v40 = vld [vmem:[%s4378_s0 + $0x14c] sm:$0xf0] }
  0x71   :  { %2112 = vmatpush.bf16.msrb.mxu3 %v3410_v43  ;;  %1989 = vmatmul.bf16.gmra.mxu0 %v2419_v57  ;;  %v2436_v43 = vld [vmem:[%s4378_s0 + $0x150] sm:$0xf0]  ;;  %v2435_v51 = vor.u32 %v3280_v40, %v2434_v39  ;;  %v3415_v57 = vld [vmem:[%s4377_s1 + $0x408] sm:$0xff]  ;;  %v3449_v40 = vld [vmem:[%s4377_s1 + $0x518] sm:$0xff] }
  0x72   :  { %2056 = vmatpush.bf16.msrb.mxu0 %v3385_v53  ;;  %2008 = vmatmul.bf16.gmra.mxu1 %v2423_v59  ;;  %v2439_v53 = vor.u32 %v3268_v42, %v2436_v43  ;;  %v3439_v59 = vld [vmem:[%s4377_s1 + $0x4c8] sm:$0xff]  ;;  %v3457_v42 = vld [vmem:[%s4377_s1 + $0x558] sm:$0xff]  ;;  %v3470_v43 = vld [vmem:[%s4377_s1 + $0x5c0] sm:$0xff] }
  0x73   :  { %2075 = vmatpush.bf16.msrb.mxu1 %v3393_v47  ;;  %2027 = vmatmul.bf16.gmra.mxu2 %v2427_v60  ;;  %v3432_v47 = vld [vmem:[%s4377_s1 + $0x490] sm:$0xff]  ;;  %v3430_v60 = vld [vmem:[%s4377_s1 + $0x480] sm:$0xff] }
  0x74   :  { %2094 = vmatpush.bf16.msrb.mxu2 %v3401_v44  ;;  %2046 = vmatmul.bf16.gmra.mxu3 %v2431_v61  ;;  %v2442_v44 = vld [vmem:[%s4378_s0 + $0xf8] sm:$0xf]  ;;  %v3414_v61 = vld [vmem:[%s4377_s1 + $0x400] sm:$0xff] }
  0x75   :  { %2113 = vmatpush.bf16.msrb.mxu3 %v3409_v55  ;;  %v2443_v54 = vor.u32 %v3281_v45, %v2442_v44  ;;  %v2447_v55 = vor.u32 %v3269_v46, %v2444_v48  ;;  %v2450_v45 = vld [vmem:[%s4378_s0 + $0x100] sm:$0xf]  ;;  %v3464_v46 = vld [vmem:[%s4377_s1 + $0x590] sm:$0xff]  ;;  %v3270_v48 = vld [vmem:[%s4378_s0 + $0x104] sm:$0xf] }
  0x76   :  { %2057 = vmatpush.bf16.msrb.mxu0 %v3384_v62  ;;  %v3422_v62 = vld [vmem:[%s4377_s1 + $0x440] sm:$0xff] }
  0x77   :  { %2076 = vmatpush.bf16.msrb.mxu1 %v3392_v58  ;;  %v3423_v58 = vld [vmem:[%s4377_s1 + $0x448] sm:$0xff] }
  0x78   :  { %2095 = vmatpush.bf16.msrb.mxu2 %v3400_v56  ;;  %v3431_v56 = vld [vmem:[%s4377_s1 + $0x488] sm:$0xff] }
  0x79   :  { %2114 = vmatpush.bf16.msrb.mxu3 %v3408_v63  ;;  %v3438_v63 = vld [vmem:[%s4377_s1 + $0x4c0] sm:$0xff] }
  0x7a   :  { %2058 = vmatpush.bf16.msrb.mxu0 %v3383_v2  ;;  %v3461_v2 = vld [vmem:[%s4377_s1 + $0x578] sm:$0xff] }
  0x7b   :  { %2077 = vmatpush.bf16.msrb.mxu1 %v3391_v1  ;;  %v3453_v1 = vld [vmem:[%s4377_s1 + $0x538] sm:$0xff] }
  0x7c   :  { %2096 = vmatpush.bf16.msrb.mxu2 %v3399_v0  ;;  %v3469_v0 = vld [vmem:[%s4377_s1 + $0x5b8] sm:$0xff] }
  0x7d   :  { %2115 = vmatpush.bf16.msrb.mxu3 %v3407_v3  ;;  %v3474_v3 = vld [vmem:[%s4377_s1 + $0x5e0] sm:$0xff] }
  0x7e   :  { %2059 = vmatpush.bf16.msrb.mxu0 %v3382_v8  ;;  %v3468_v8 = vld [vmem:[%s4377_s1 + $0x5b0] sm:$0xff] }
  0x7f   :  { %2078 = vmatpush.bf16.msrb.mxu1 %v3390_v5  ;;  %v4186_v5 = vld [vmem:[%s4379_s2] ss:$0 sm:$0xff] }
  0x80   :  { %2097 = vmatpush.bf16.msrb.mxu2 %v3398_v4  ;;  %v2354_v4 = vld [vmem:[%s4378_s0 + $0x40] sm:$0xf] }
  0x81   :  { %2116 = vmatpush.bf16.msrb.mxu3 %v3406_v9  ;;  %2060 = vmatmul.bf16.vlgmr.msrb.gmra.mxu0 %v2339_v23  ;;  %v2356_v9 = vld [vmem:[%s4378_s0 + $0xa0] sm:$0xf0] }
  0x82   :  { %2128 = vmatpush.bf16.msra.mxu0 %v3421_v10  ;;  %2079 = vmatmul.bf16.vlgmr.msrb.gmra.mxu1 %v2343_v25  ;;  %v3452_v10 = vld [vmem:[%s4377_s1 + $0x530] sm:$0xff]  ;;  %v3451_v25 = vld [vmem:[%s4377_s1 + $0x528] sm:$0xff] }
  0x83   :  { %2147 = vmatpush.bf16.msra.mxu1 %v3429_v7  ;;  %2098 = vmatmul.bf16.vlgmr.msrb.gmra.mxu2 %v2347_v26  ;;  %v3246_v7 = vld [vmem:[%s4378_s0 + $0x44] sm:$0xf]  ;;  %v3459_v26 = vld [vmem:[%s4377_s1 + $0x568] sm:$0xff] }
  0x84   :  { %2166 = vmatpush.bf16.msra.mxu2 %v3437_v6  ;;  %2117 = vmatmul.bf16.vlgmr.msrb.gmra.mxu3 %v2351_v27  ;;  %v3258_v6 = vld [vmem:[%s4378_s0 + $0x9c] sm:$0xf0]  ;;  %v2359_v21 = vor.u32 %v3246_v7, %v2356_v9  ;;  %v3472_v27 = vld [vmem:[%s4377_s1 + $0x5d0] sm:$0xff] }
  0x85   :  { %2185 = vmatpush.bf16.msra.mxu3 %v3445_v12  ;;  %v2362_v12 = vld [vmem:[%s4378_s0 + $0x48] sm:$0xf]  ;;  %v2355_v17 = vor.u32 %v3258_v6, %v2354_v4  ;;  %v3446_v9 = vld [vmem:[%s4377_s1 + $0x500] sm:$0xff] }
  0x86   :  { %2129 = vmatpush.bf16.msra.mxu0 %v3420_v22  ;;  %v3455_v6 = vld [vmem:[%s4377_s1 + $0x548] sm:$0xff] }
  0x87   :  { %2148 = vmatpush.bf16.msra.mxu1 %v3428_v16  ;;  %v2364_v16 = vld [vmem:[%s4378_s0 + $0xa8] sm:$0xf0] }
  0x88   :  { %2167 = vmatpush.bf16.msra.mxu2 %v3436_v13  ;;  %v3259_v13 = vld [vmem:[%s4378_s0 + $0xa4] sm:$0xf0] }
  0x89   :  { %2186 = vmatpush.bf16.msra.mxu3 %v3444_v24  ;;  %v2363_v22 = vor.u32 %v3259_v13, %v2362_v12  ;;  %v2367_v24 = vor.u32 %v3247_v15, %v2364_v16 }
  0x8a   :  { %2130 = vmatpush.bf16.msra.mxu0 %v3419_v29  ;;  %v3466_v29 = vld [vmem:[%s4377_s1 + $0x5a0] sm:$0xff] }
  0x8b   :  { %2149 = vmatpush.bf16.msra.mxu1 %v3427_v30  ;;  %v3450_v30 = vld [vmem:[%s4377_s1 + $0x520] sm:$0xff] }
  0x8c   :  { %2168 = vmatpush.bf16.msra.mxu2 %v3435_v28 }
  0x8d   :  { %2187 = vmatpush.bf16.msra.mxu3 %v3443_v31  ;;  %v3458_v31 = vld [vmem:[%s4377_s1 + $0x560] sm:$0xff] }
  0x8e   :  { %2131 = vmatpush.bf16.msra.mxu0 %v3418_v33 }
  0x8f   :  { %2150 = vmatpush.bf16.msra.mxu1 %v3426_v34 }
  0x90   :  { %2169 = vmatpush.bf16.msra.mxu2 %v3434_v32  ;;  %v3471_v32 = vld [vmem:[%s4377_s1 + $0x5c8] sm:$0xff] }
  0x91   :  { %2188 = vmatpush.bf16.msra.mxu3 %v3442_v35  ;;  %2065 = vmatmul.bf16.gmra.mxu0 %v2435_v51  ;;  %v3465_v35 = vld [vmem:[%s4377_s1 + $0x598] sm:$0xff]  ;;  %v3283_v51 = vld [vmem:[%s4378_s0 + $0x164] sm:$0xf0] }
  0x92   :  { %2132 = vmatpush.bf16.msra.mxu0 %v3417_v37  ;;  %2084 = vmatmul.bf16.gmra.mxu1 %v2439_v53  ;;  %v3271_v53 = vld [vmem:[%s4378_s0 + $0x10c] sm:$0xf] }
  0x93   :  { %2151 = vmatpush.bf16.msra.mxu1 %v3425_v38  ;;  %2103 = vmatmul.bf16.gmra.mxu2 %v2443_v54  ;;  %v2460_v54 = vld [vmem:[%s4378_s0 + $0x168] sm:$0xf0] }
  0x94   :  { %2170 = vmatpush.bf16.msra.mxu2 %v3433_v36  ;;  %2122 = vmatmul.bf16.gmra.mxu3 %v2447_v55  ;;  %v3456_v55 = vld [vmem:[%s4377_s1 + $0x550] sm:$0xff] }
  0x95   :  { %2189 = vmatpush.bf16.msra.mxu3 %v3441_v41 }
  0x96   :  { %2133 = vmatpush.bf16.msra.mxu0 %v3416_v49  ;;  %v2452_v49 = vld [vmem:[%s4378_s0 + $0x160] sm:$0xf0] }
  0x97   :  { %2152 = vmatpush.bf16.msra.mxu1 %v3424_v50  ;;  %v2458_v50 = vld [vmem:[%s4378_s0 + $0x108] sm:$0xf] }
  0x98   :  { %2171 = vmatpush.bf16.msra.mxu2 %v3432_v47  ;;  %v3282_v47 = vld [vmem:[%s4378_s0 + $0x15c] sm:$0xf0] }
  0x99   :  { %2190 = vmatpush.bf16.msra.mxu3 %v3440_v52  ;;  %v3448_v52 = vld [vmem:[%s4377_s1 + $0x510] sm:$0xff] }
  0x9a   :  { %2134 = vmatpush.bf16.msra.mxu0 %v3415_v57 }
  0x9b   :  { %2153 = vmatpush.bf16.msra.mxu1 %v3423_v58  ;;  %v2451_v58 = vor.u32 %v3282_v47, %v2450_v45  ;;  %v3284_v47 = vld [vmem:[%s4378_s0 + $0x16c] sm:$0xf0] }
  0x9c   :  { %2172 = vmatpush.bf16.msra.mxu2 %v3431_v56 }
  0x9d   :  { %2191 = vmatpush.bf16.msra.mxu3 %v3439_v59  ;;  %v3463_v59 = vld [vmem:[%s4377_s1 + $0x588] sm:$0xff] }
  0x9e   :  { %2135 = vmatpush.bf16.msra.mxu0 %v3414_v61  ;;  %v1833_v19 = vpop.f32.mrf.mxu0 }
  0x9f   :  { %2154 = vmatpush.bf16.msra.mxu1 %v3422_v62  ;;  %v1852_v20 = vpop.f32.mrf.mxu1  ;;  %v1834_v23 = vadd.f32 %v4186_v5, %v1833_v19  ;;  %v2370_v19 = vld [vmem:[%s4378_s0 + $0x50] sm:$0xf] }
  0xa0   :  { %2173 = vmatpush.bf16.msra.mxu2 %v3430_v60 }
  0xa1   :  { %2192 = vmatpush.bf16.msra.mxu3 %v3438_v63  ;;  %v1853_v28 = vadd.f32 %v1852_v20, %v1834_v23  ;;  %2136 = vmatmul.bf16.vlgmr.msra.gmra.mxu0 %v2355_v17  ;;  %v2455_v63 = vor.u32 %v3270_v48, %v2452_v49  ;;  %v3260_v20 = vld [vmem:[%s4378_s0 + $0xac] sm:$0xf0]  ;;  %v3261_v23 = vld [vmem:[%s4378_s0 + $0xb4] sm:$0xf0]  ;;  %v3272_v48 = vld [vmem:[%s4378_s0 + $0x114] sm:$0xf] }
  0xa2   :  { %2204 = vmatpush.bf16.msrb.mxu0 %v3453_v1  ;;  %2155 = vmatmul.bf16.vlgmr.msra.gmra.mxu1 %v2359_v21  ;;  %v3248_v21 = vld [vmem:[%s4378_s0 + $0x54] sm:$0xf] }
  0xa3   :  { %2223 = vmatpush.bf16.msrb.mxu1 %v3461_v2  ;;  %2174 = vmatmul.bf16.vlgmr.msra.gmra.mxu2 %v2363_v22  ;;  %v2463_v2 = vor.u32 %v3271_v53, %v2460_v54  ;;  %v2378_v22 = vld [vmem:[%s4378_s0 + $0x58] sm:$0xf]  ;;  %v2468_v49 = vld [vmem:[%s4378_s0 + $0x170] sm:$0xf0]  ;;  %v2476_v53 = vld [vmem:[%s4378_s0 + $0x178] sm:$0xf0] }
  0xa4   :  { %2242 = vmatpush.bf16.msrb.mxu2 %v3469_v0  ;;  %2193 = vmatmul.bf16.vlgmr.msra.gmra.mxu3 %v2367_v24  ;;  %v2459_v0 = vor.u32 %v3283_v51, %v2458_v50  ;;  %v3249_v24 = vld [vmem:[%s4378_s0 + $0x5c] sm:$0xf]  ;;  %v2474_v50 = vld [vmem:[%s4378_s0 + $0x118] sm:$0xf] }
  0xa5   :  { %2264 = vmatpush.bf16.msrb.mxu3 %v3474_v3  ;;  %v3447_v3 = vld [vmem:[%s4377_s1 + $0x508] sm:$0xff]  ;;  %v3285_v51 = vld [vmem:[%s4378_s0 + $0x174] sm:$0xf0] }
  0xa6   :  { %2205 = vmatpush.bf16.msrb.mxu0 %v3452_v10  ;;  %v1871_v33 = vpop.f32.mrf.mxu2  ;;  %v1835_v37 = vpop.f32.mrf.mxu0  ;;  %v3454_v10 = vld [vmem:[%s4377_s1 + $0x540] sm:$0xff] }
  0xa7   :  { %2224 = vmatpush.bf16.msrb.mxu1 %v3460_v11  ;;  %v1890_v34 = vpop.f32.mrf.mxu3  ;;  %v1872_v36 = vadd.f32 %v1871_v33, %v1853_v28  ;;  %v1854_v38 = vpop.f32.mrf.mxu1  ;;  %v1836_v39 = vadd.f32 %v4186_v5, %v1835_v37  ;;  %v2371_v28 = vor.u32 %v3260_v20, %v2370_v19 }
  0xa8   :  { %2243 = vmatpush.bf16.msrb.mxu2 %v3468_v8  ;;  %v3462_v8 = vld [vmem:[%s4377_s1 + $0x580] sm:$0xff] }
  0xa9   :  { %2265 = vmatpush.bf16.msrb.mxu3 %v3473_v14  ;;  %v4253_v41 = vadd.f32 %v1890_v34, %v1872_v36  ;;  %v1855_v44 = vadd.f32 %v1854_v38, %v1836_v39 }
  0xaa   :  { %2206 = vmatpush.bf16.msrb.mxu0 %v3451_v25  ;;  %v2380_v25 = vld [vmem:[%s4378_s0 + $0xb8] sm:$0xf0] }
  0xab   :  { %2225 = vmatpush.bf16.msrb.mxu1 %v3459_v26 }
  0xac   :  { %2244 = vmatpush.bf16.msrb.mxu2 %v3467_v18 }
  0xad   :  { %2266 = vmatpush.bf16.msrb.mxu3 %v3472_v27 }
  0xae   :  { %2207 = vmatpush.bf16.msrb.mxu0 %v3450_v30  ;;  %v1873_v56 = vpop.f32.mrf.mxu2  ;;  %v1838_v61 = vpop.f32.mrf.mxu0 }
  0xaf   :  { %2226 = vmatpush.bf16.msrb.mxu1 %v3458_v31  ;;  %v1892_v57 = vpop.f32.mrf.mxu3  ;;  %v1874_v60 = vadd.f32 %v1873_v56, %v1855_v44  ;;  %v1857_v62 = vpop.f32.mrf.mxu1  ;;  %v1839_v1 = vadd.f32 %v4186_v5, %v1838_v61 }
  0xb0   :  { %2245 = vmatpush.bf16.msrb.mxu2 %v3466_v29 }
  0xb1   :  { %2267 = vmatpush.bf16.msrb.mxu3 %v3471_v32  ;;  %v1893_v4 = vadd.f32 %v1892_v57, %v1874_v60  ;;  %v1858_v7 = vadd.f32 %v1857_v62, %v1839_v1  ;;  %2141 = vmatmul.bf16.gmra.mxu0 %v2451_v58  ;;  %v2379_v32 = vor.u32 %v3261_v23, %v2378_v22 }
  0xb2   :  { %2208 = vmatpush.bf16.msrb.mxu0 %v3449_v40  ;;  %2160 = vmatmul.bf16.gmra.mxu1 %v2455_v63  ;;  %v2475_v60 = vor.u32 %v3285_v51, %v2474_v50 }
  0xb3   :  { %2227 = vmatpush.bf16.msrb.mxu1 %v3457_v42  ;;  %2179 = vmatmul.bf16.gmra.mxu2 %v2459_v0 }
  0xb4   :  { %2246 = vmatpush.bf16.msrb.mxu2 %v3465_v35  ;;  %2198 = vmatmul.bf16.gmra.mxu3 %v2463_v2  ;;  %v2383_v35 = vor.u32 %v3249_v24, %v2380_v25 }
  0xb5   :  { %2268 = vmatpush.bf16.msrb.mxu3 %v3470_v43 }
  0xb6   :  { %2209 = vmatpush.bf16.msrb.mxu0 %v3448_v52  ;;  %v1876_v11 = vpop.f32.mrf.mxu2  ;;  %v1840_v14 = vpop.f32.mrf.mxu0  ;;  %v3273_v52 = vld [vmem:[%s4378_s0 + $0x11c] sm:$0xf] }
  0xb7   :  { %2228 = vmatpush.bf16.msrb.mxu1 %v3456_v55  ;;  %v1895_v12 = vpop.f32.mrf.mxu3  ;;  %v1877_v13 = vadd.f32 %v1876_v11, %v1858_v7  ;;  %v1859_v15 = vpop.f32.mrf.mxu1  ;;  %v1841_v16 = vadd.f32 %v4186_v5, %v1840_v14  ;;  %v2372_v5 = vld [vmem:[%s4378_s0 + $0xb0] sm:$0xf0]  ;;  %v2479_v63 = vor.u32 %v3273_v52, %v2476_v53 }
  0xb8   :  { %2247 = vmatpush.bf16.msrb.mxu2 %v3464_v46  ;;  %v2375_v31 = vor.u32 %v3248_v21, %v2372_v5 }
  0xb9   :  { %v1896_v17 = vadd.f32 %v1895_v12, %v1877_v13  ;;  %v1860_v18 = vadd.f32 %v1859_v15, %v1841_v16 }
  0xba   :  { %2210 = vmatpush.bf16.msrb.mxu0 %v3447_v3 }
  0xbb   :  { %2229 = vmatpush.bf16.msrb.mxu1 %v3455_v6 }
  0xbc   :  { %2248 = vmatpush.bf16.msrb.mxu2 %v3463_v59  ;;  %v2471_v59 = vor.u32 %v3272_v48, %v2468_v49 }
  0xbe   :  { %2211 = vmatpush.bf16.msrb.mxu0 %v3446_v9  ;;  %v1878_v26 = vpop.f32.mrf.mxu2  ;;  %v1909_v30 = vpop.f32.mrf.mxu0 }
  0xbf   :  { %2230 = vmatpush.bf16.msrb.mxu1 %v3454_v10  ;;  %v1897_v27 = vpop.f32.mrf.mxu3  ;;  %v1879_v29 = vadd.f32 %v1878_v26, %v1860_v18  ;;  %v1910_v33 = vadd.f32 %v1909_v30, %v4253_v41  ;;  %v1928_v34 = vpop.f32.mrf.mxu1  ;;  %v2466_v41 = vld [vmem:[%s4378_s0 + $0x110] sm:$0xf] }
  0xc0   :  { %2249 = vmatpush.bf16.msrb.mxu2 %v3462_v8  ;;  %v2467_v55 = vor.u32 %v3284_v47, %v2466_v41 }
  0xc1   :  { %v1898_v36 = vadd.f32 %v1897_v27, %v1879_v29  ;;  %v1929_v37 = vadd.f32 %v1928_v34, %v1910_v33  ;;  %2212 = vmatmul.bf16.vlgmr.msrb.gmra.mxu0 %v2371_v28 }
  0xc2   :  { %2231 = vmatmul.bf16.vlgmr.msrb.gmra.mxu1 %v2375_v31 }
  0xc3   :  { %2250 = vmatmul.bf16.vlgmr.msrb.gmra.mxu2 %v2379_v32 }
  0xc4   :  { %3236 = vmatmul.msk.bf16.vlgmr.msrb.gmra.mxu3 %vm1817_vm0, %v2383_v35 }
  0xc6   :  { %v1947_v38 = vpop.f32.mrf.mxu2  ;;  %v1911_v42 = vpop.f32.mrf.mxu0 }
  0xc7   :  { %v1948_v39 = vadd.f32 %v1947_v38, %v1929_v37  ;;  %v1966_v40 = vpop.f32.mrf.mxu3  ;;  %v1912_v43 = vadd.f32 %v1911_v42, %v1893_v4  ;;  %v1930_v44 = vpop.f32.mrf.mxu1 }
  0xc9   :  { %v1967_v45 = vadd.f32 %v1966_v40, %v1948_v39  ;;  %v1931_v46 = vadd.f32 %v1930_v44, %v1912_v43 }
  0xce   :  { %v1949_v54 = vpop.f32.mrf.mxu2  ;;  %v1914_v58 = vpop.f32.mrf.mxu0 }
  0xcf   :  { %v1950_v56 = vadd.f32 %v1949_v54, %v1931_v46  ;;  %v1968_v57 = vpop.f32.mrf.mxu3  ;;  %v1915_v61 = vadd.f32 %v1914_v58, %v1896_v17  ;;  %v1933_v62 = vpop.f32.mrf.mxu1 }
  0xd1   :  { %v1969_v0 = vadd.f32 %v1968_v57, %v1950_v56  ;;  %v1934_v1 = vadd.f32 %v1933_v62, %v1915_v61  ;;  %2217 = vmatmul.bf16.gmra.mxu0 %v2467_v55 }
  0xd2   :  { %2236 = vmatmul.bf16.gmra.mxu1 %v2471_v59 }
  0xd3   :  { %2255 = vmatmul.bf16.gmra.mxu2 %v2475_v60 }
  0xd4   :  { %3237 = vmatmul.msk.bf16.gmra.mxu3 %vm1817_vm0, %v2479_v63 }
  0xd6   :  { %v1952_v2 = vpop.f32.mrf.mxu2  ;;  %v1916_v6 = vpop.f32.mrf.mxu0 }
  0xd7   :  { %v1953_v3 = vadd.f32 %v1952_v2, %v1934_v1  ;;  %v1971_v4 = vpop.f32.mrf.mxu3  ;;  %v1917_v7 = vadd.f32 %v1916_v6, %v1898_v36  ;;  %v1935_v8 = vpop.f32.mrf.mxu1 }
  0xd9   :  { %v1972_v9 = vadd.f32 %v1971_v4, %v1953_v3  ;;  %v1936_v10 = vadd.f32 %v1935_v8, %v1917_v7 }
  0xde   :  { %v1954_v11 = vpop.f32.mrf.mxu2  ;;  %v1985_v14 = vpop.f32.mrf.mxu0 }
  0xdf   :  { %v1955_v12 = vadd.f32 %v1954_v11, %v1936_v10  ;;  %v1973_v13 = vpop.f32.mrf.mxu3  ;;  %v1986_v15 = vadd.f32 %v1985_v14, %v1967_v45  ;;  %v2004_v16 = vpop.f32.mrf.mxu1 }
  0xe1   :  { %v1974_v17 = vadd.f32 %v1973_v13, %v1955_v12  ;;  %v2005_v18 = vadd.f32 %v2004_v16, %v1986_v15 }
  0xe6   :  { %v2023_v19 = vpop.f32.mrf.mxu2  ;;  %v1987_v5 = vpop.f32.mrf.mxu0 }
  0xe7   :  { %v2024_v20 = vadd.f32 %v2023_v19, %v2005_v18  ;;  %v2042_v21 = vpop.f32.mrf.mxu3  ;;  %v1988_v22 = vadd.f32 %v1987_v5, %v1969_v0  ;;  %v2006_v23 = vpop.f32.mrf.mxu1 }
  0xe9   :  { %v2043_v24 = vadd.f32 %v2042_v21, %v2024_v20  ;;  %v2007_v25 = vadd.f32 %v2006_v23, %v1988_v22 }
  0xee   :  { %v2025_v26 = vpop.f32.mrf.mxu2  ;;  %v1990_v29 = vpop.f32.mrf.mxu0 }
  0xef   :  { %v2026_v27 = vadd.f32 %v2025_v26, %v2007_v25  ;;  %v2044_v28 = vpop.f32.mrf.mxu3  ;;  %v1991_v30 = vadd.f32 %v1990_v29, %v1972_v9  ;;  %v2009_v31 = vpop.f32.mrf.mxu1 }
  0xf1   :  { %v2045_v32 = vadd.f32 %v2044_v28, %v2026_v27  ;;  %v2010_v33 = vadd.f32 %v2009_v31, %v1991_v30 }
  0xf6   :  { %v2028_v34 = vpop.f32.mrf.mxu2  ;;  %v1992_v37 = vpop.f32.mrf.mxu0 }
  0xf7   :  { %v2029_v35 = vadd.f32 %v2028_v34, %v2010_v33  ;;  %v2047_v36 = vpop.f32.mrf.mxu3  ;;  %v1993_v38 = vadd.f32 %v1992_v37, %v1974_v17  ;;  %v2011_v39 = vpop.f32.mrf.mxu1 }
  0xf9   :  { %v2048_v40 = vadd.f32 %v2047_v36, %v2029_v35  ;;  %v2012_v42 = vadd.f32 %v2011_v39, %v1993_v38 }
  0xfe   :  { %v2030_v43 = vpop.f32.mrf.mxu2  ;;  %v2061_v46 = vpop.f32.mrf.mxu0 }
  0xff   :  { %v2031_v44 = vadd.f32 %v2030_v43, %v2012_v42  ;;  %v2049_v45 = vpop.f32.mrf.mxu3  ;;  %v2080_v41 = vpop.f32.mrf.mxu1  ;;  %v2062_v4 = vadd.f32 %v2061_v46, %v2043_v24 }
 0x101   :  { %v2050_v47 = vadd.f32 %v2049_v45, %v2031_v44  ;;  %v2081_v6 = vadd.f32 %v2080_v41, %v2062_v4 }
 0x106   :  { %v2099_v48 = vpop.f32.mrf.mxu2  ;;  %v2063_v50 = vpop.f32.mrf.mxu0 }
 0x107   :  { %v2118_v49 = vpop.f32.mrf.mxu3  ;;  %v2082_v51 = vpop.f32.mrf.mxu1  ;;  %v2100_v8 = vadd.f32 %v2099_v48, %v2081_v6  ;;  %v2064_v12 = vadd.f32 %v2063_v50, %v2045_v32 }
 0x109   :  { %v2119_v13 = vadd.f32 %v2118_v49, %v2100_v8  ;;  %v2083_v14 = vadd.f32 %v2082_v51, %v2064_v12 }
 0x10e   :  { %v2101_v52 = vpop.f32.mrf.mxu2  ;;  %v2066_v54 = vpop.f32.mrf.mxu0 }
 0x10f   :  { %v2120_v53 = vpop.f32.mrf.mxu3  ;;  %v2085_v55 = vpop.f32.mrf.mxu1  ;;  %v2102_v17 = vadd.f32 %v2101_v52, %v2083_v14  ;;  %v2067_v21 = vadd.f32 %v2066_v54, %v2048_v40 }
 0x111   :  { %v2121_v22 = vadd.f32 %v2120_v53, %v2102_v17  ;;  %v2086_v24 = vadd.f32 %v2085_v55, %v2067_v21 }
 0x116   :  { %v2104_v56 = vpop.f32.mrf.mxu2  ;;  %v2068_v58 = vpop.f32.mrf.mxu0 }
 0x117   :  { %v2123_v57 = vpop.f32.mrf.mxu3  ;;  %v2087_v59 = vpop.f32.mrf.mxu1  ;;  %v2105_v27 = vadd.f32 %v2104_v56, %v2086_v24  ;;  %v2069_v32 = vadd.f32 %v2068_v58, %v2050_v47 }
 0x119   :  { %v2124_v35 = vadd.f32 %v2123_v57, %v2105_v27  ;;  %v2088_v37 = vadd.f32 %v2087_v59, %v2069_v32 }
 0x11e   :  { %v2106_v60 = vpop.f32.mrf.mxu2  ;;  %v2137_v62 = vpop.f32.mrf.mxu0 }
 0x11f   :  { %v2125_v61 = vpop.f32.mrf.mxu3  ;;  %v2156_v63 = vpop.f32.mrf.mxu1  ;;  %v2138_v15 = vadd.f32 %v2137_v62, %v2119_v13  ;;  %v2107_v42 = vadd.f32 %v2106_v60, %v2088_v37 }
 0x121   :  { %v2157_v5 = vadd.f32 %v2156_v63, %v2138_v15  ;;  %v2126_v51 = vadd.f32 %v2125_v61, %v2107_v42 }
 0x126   :  { %v2175_v0 = vpop.f32.mrf.mxu2  ;;  %v2139_v2 = vpop.f32.mrf.mxu0 }
 0x127   :  { %v2194_v1 = vpop.f32.mrf.mxu3  ;;  %v2158_v3 = vpop.f32.mrf.mxu1  ;;  %v2176_v23 = vadd.f32 %v2175_v0, %v2157_v5  ;;  %v2140_v25 = vadd.f32 %v2139_v2, %v2121_v22 }
 0x129   :  { %v2195_v28 = vadd.f32 %v2194_v1, %v2176_v23  ;;  %v2159_v33 = vadd.f32 %v2158_v3, %v2140_v25 }
 0x12e   :  { %v2177_v7 = vpop.f32.mrf.mxu2  ;;  %v2142_v10 = vpop.f32.mrf.mxu0 }
 0x12f   :  { %v2196_v9 = vpop.f32.mrf.mxu3  ;;  %v2161_v11 = vpop.f32.mrf.mxu1  ;;  %v2178_v36 = vadd.f32 %v2177_v7, %v2159_v33  ;;  %v2143_v38 = vadd.f32 %v2142_v10, %v2124_v35 }
 0x131   :  { %v2197_v43 = vadd.f32 %v2196_v9, %v2178_v36  ;;  %v2162_v48 = vadd.f32 %v2161_v11, %v2143_v38 }
 0x136   :  { %v2180_v16 = vpop.f32.mrf.mxu2  ;;  %v2144_v19 = vpop.f32.mrf.mxu0 }
 0x137   :  { %v2199_v18 = vpop.f32.mrf.mxu3  ;;  %v2163_v20 = vpop.f32.mrf.mxu1  ;;  %v2181_v52 = vadd.f32 %v2180_v16, %v2162_v48  ;;  %v2145_v47 = vadd.f32 %v2144_v19, %v2126_v51 }
 0x139   :  { %v2200_v55 = vadd.f32 %v2199_v18, %v2181_v52  ;;  %v2164_v59 = vadd.f32 %v2163_v20, %v2145_v47 }
 0x13e   :  { %v2182_v26 = vpop.f32.mrf.mxu2  ;;  %v2213_v30 = vpop.f32.mrf.mxu0 }
 0x13f   :  { %v2201_v29 = vpop.f32.mrf.mxu3  ;;  %v2232_v31 = vpop.f32.mrf.mxu1  ;;  %v2214_v34 = vadd.f32 %v2213_v30, %v2195_v28  ;;  %v2183_v0 = vadd.f32 %v2182_v26, %v2164_v59 }
 0x141   :  { %v2233_v39 = vadd.f32 %v2232_v31, %v2214_v34  ;;  %v2202_v2 = vadd.f32 %v2201_v29, %v2183_v0 }
 0x146   :  { %v2251_v40 = vpop.f32.mrf.mxu2  ;;  %v2215_v46 = vpop.f32.mrf.mxu0 }
 0x147   :  { %v2252_v44 = vadd.f32 %v2251_v40, %v2233_v39  ;;  %v2270_v45 = vpop.f32.mrf.mxu3  ;;  %v2234_v41 = vpop.f32.mrf.mxu1  ;;  %v2216_v50 = vadd.f32 %v2215_v46, %v2197_v43 }
 0x149   :  { %v2271_v49 = vadd.f32 %v2270_v45, %v2252_v44  ;;  %v2235_v53 = vadd.f32 %v2234_v41, %v2216_v50 }
 0x14b   :  { %2280 = vst [vmem:[%s4380_s3] sm:$0xff] %v2271_v49 }
 0x14e   :  { %v2253_v54 = vpop.f32.mrf.mxu2  ;;  %v2218_v58 = vpop.f32.mrf.mxu0 }
 0x14f   :  { %v2254_v56 = vadd.f32 %v2253_v54, %v2235_v53  ;;  %v2272_v57 = vpop.f32.mrf.mxu3  ;;  %v2219_v62 = vadd.f32 %v2218_v58, %v2200_v55  ;;  %v2237_v63 = vpop.f32.mrf.mxu1 }
 0x151   :  { %v2273_v60 = vadd.f32 %v2272_v57, %v2254_v56  ;;  %v2238_v61 = vadd.f32 %v2237_v63, %v2219_v62 }
 0x153   :  { %2281 = vst [vmem:[%s4380_s3 + $0x8] sm:$0xff] %v2273_v60 }
 0x156   :  { %v2256_v1 = vpop.f32.mrf.mxu2  ;;  %v2220_v6 = vpop.f32.mrf.mxu0 }
 0x157   :  { %v2257_v3 = vadd.f32 %v2256_v1, %v2238_v61  ;;  %v2275_v4 = vpop.f32.mrf.mxu3  ;;  %v2221_v8 = vadd.f32 %v2220_v6, %v2202_v2  ;;  %v2239_v9 = vpop.f32.mrf.mxu1 }
 0x159   :  { %v2276_v7 = vadd.f32 %v2275_v4, %v2257_v3  ;;  %v2240_v10 = vadd.f32 %v2239_v9, %v2221_v8 }
 0x15b   :  { %2282 = vst [vmem:[%s4380_s3 + $0x10] sm:$0xff] %v2276_v7 }
 0x15e   :  { %v2258_v11 = vpop.f32.mrf.mxu2 }
 0x15f   :  { %v2259_v12 = vadd.f32 %v2258_v11, %v2240_v10  ;;  %v2277_v13 = vpop.f32.mrf.mxu3 }
 0x161   :  { %v2278_v14 = vadd.f32 %v2277_v13, %v2259_v12 }
 0x163   :  { %2283 = vst [vmem:[%s4380_s3 + $0x18] sm:$0xff] %v2278_v14 }

</bundles_post_ra>
